<compile_context>
chip_gen: v5e
topology: v5e:2x2
jax: 0.10.0
libtpu: 0.0.40
codegen_flags: <defaults>
</compile_context>

<pallas_src>
import functools

import jax
import jax.numpy as jnp
from jax.experimental import pallas as pl
from jax.experimental.pallas import tpu as pltpu


def ngram_kernel(xtok_ref, w_ref, b_ref, out_ref, *, classes):
    """One grid step handles a tile of `tile_n` rows.

    xtok: (tile_n, K) int32 context tokens in [0, V]  (V == pad token)
    w:    (F_pad, V_pad) f32; rows [0, K*classes) hold the transposed Linear
          weight, remaining rows are zero
    b:    (1, V_pad) f32 bias (zero in the padded columns)
    out:  (tile_n, V_pad) f32 logits (padded columns end up exactly 0)
    """
    xtok = xtok_ref[...]                        # (tile_n, K) int32
    tile_n, k = xtok.shape
    f_pad = w_ref.shape[0]

    # Flattened one-hot directly in (tile_n, F_pad) layout: column
    # kk*classes + token_kk is 1 for each of the K context slots.  K is small
    # and static -> the Python loop unrolls into K vreg-wide compares (VPU).
    col = jax.lax.broadcasted_iota(jnp.int32, (tile_n, f_pad), 1)
    xenc = jnp.zeros((tile_n, f_pad), jnp.float32)
    for kk in range(k):
        tgt = xtok[:, kk:kk + 1] + kk * classes           # (tile_n, 1)
        xenc = xenc + (col == tgt).astype(jnp.float32)    # disjoint slots

    # Single 128-deep, 128-wide MXU contraction per tile (F_pad = V_pad = 128).
    out_ref[...] = (
        jnp.dot(xenc, w_ref[...],
                preferred_element_type=jnp.float32,
                precision=jax.lax.Precision.HIGHEST)
        + b_ref[...]
    )


def _round_up(x, m):
    return ((x + m - 1) // m) * m


def ngram_forward(idx, weight, bias, vocab_size, markov_order, max_tile_n=512):
    """Equivalent of Ngram.forward(idx, targets=None)[0] -> logits (B, L, V)."""
    b, l = idx.shape
    v = vocab_size
    k = markov_order
    c = v + 1                       # classes per context slot (incl. pad token)
    f = k * c                       # flattened one-hot width

    # ---- Context construction (matches torch.roll + idx[:, 0] = vocab_size).
    cur = idx[:, :, None].astype(jnp.int32)
    embs = []
    for _ in range(k):
        embs.append(cur)
        cur = jnp.roll(cur, 1, axis=1)
        cur = cur.at[:, 0].set(v)
    x = jnp.concatenate(list(reversed(embs)), axis=-1)    # (B, L, K)

    n = b * l
    xtok = x.reshape(n, k)

    # ---- Lane / MXU friendly padding.
    v_pad = _round_up(v, 128)                       # 26 -> 128
    f_pad = _round_up(f, 128)                       # 81 -> 128
    tile_n = min(max_tile_n, _round_up(n, 8))       # multiple of 8 sublanes
    n_pad = _round_up(n, tile_n)

    xtok_p = jnp.zeros((n_pad, k), jnp.int32).at[:n].set(xtok)
    w_p = (jnp.zeros((f_pad, v_pad), jnp.float32)
           .at[:f, :v].set(weight.T.astype(jnp.float32)))
    b_p = jnp.zeros((1, v_pad), jnp.float32).at[0, :v].set(
        bias.astype(jnp.float32))

    grid = (n_pad // tile_n,)
    kernel = functools.partial(ngram_kernel, classes=c)

    cost = pl.CostEstimate(
        flops=2 * n_pad * f_pad * v_pad,
        transcendentals=0,
        bytes_accessed=(xtok_p.size * 4 + w_p.size * 4 + b_p.size * 4
                        + n_pad * v_pad * 4),
    )

    logits_p = pl.pallas_call(
        kernel,
        out_shape=jax.ShapeDtypeStruct((n_pad, v_pad), jnp.float32),
        grid=grid,
        in_specs=[
            pl.BlockSpec((tile_n, k), lambda i: (i, 0)),        # tiled tokens
            pl.BlockSpec((f_pad, v_pad), lambda i: (0, 0)),     # resident W
            pl.BlockSpec((1, v_pad), lambda i: (0, 0)),         # resident bias
        ],
        out_specs=pl.BlockSpec((tile_n, v_pad), lambda i: (i, 0)),
        compiler_params=pltpu.CompilerParams(
            dimension_semantics=("parallel",),
            vmem_limit_bytes=32 * 1024 * 1024,
        ),
        cost_estimate=cost,
    )(xtok_p, w_p, b_p)

    # Drop row / vocab padding and restore (B, L, V).
    return logits_p[:n, :v].reshape(b, l, v)


def ngram_forward_ref(idx, weight, bias, vocab_size, markov_order):
    """Pure-JAX reference mirroring the PyTorch module (targets=None branch)."""
    b, l = idx.shape
    v = vocab_size
    cur = idx[:, :, None].astype(jnp.int32)
    embs = []
    for _ in range(markov_order):
        embs.append(cur)
        cur = jnp.roll(cur, 1, axis=1)
        cur = cur.at[:, 0].set(v)
    x = jnp.concatenate(list(reversed(embs)), axis=-1)
    xenc = jax.nn.one_hot(x, v + 1, dtype=jnp.float32).reshape(b, l, -1)
    logits = jnp.einsum("blf,vf->blv", xenc, weight,
                        precision=jax.lax.Precision.HIGHEST) + bias
    return logits


if __name__ == "__main__":
    # TODO(synk): cross-entropy loss branch (targets != None) not implemented;
    # forward here corresponds to targets=None, returning logits only.
    vocab_size = 26      # vocal_size
    markov_order = 3
    batch, seq = 2, 8

    key = jax.random.PRNGKey(0)
    k_idx, k_w, k_b = jax.random.split(key, 3)

    fan_in = (vocab_size + 1) * markov_order
    bound = 1.0 / (fan_in ** 0.5)
    # Deterministic init mimicking nn.Linear defaults (uniform +/- 1/sqrt(fan_in)).
    weight = jax.random.uniform(k_w, (vocab_size, fan_in),
                                minval=-bound, maxval=bound,
                                dtype=jnp.float32)
    bias = jax.random.uniform(k_b, (vocab_size,),
                              minval=-bound, maxval=bound,
                              dtype=jnp.float32)
    idx = jax.random.randint(k_idx, (batch, seq), 0, vocab_size, dtype=jnp.int32)

    logits = ngram_forward(idx, weight, bias, vocab_size, markov_order)
    logits = jax.block_until_ready(logits)

    ref = ngram_forward_ref(idx, weight, bias, vocab_size, markov_order)
    assert logits.shape == (batch, seq, vocab_size)
    assert jnp.allclose(logits, ref, atol=1e-4, rtol=1e-4), "mismatch vs reference"

    print("KERNEL_OK")
</pallas_src>

<mosaic_0001>
module attributes {stable_mosaic.version = 11 : i64} {
  func.func @ngram_kernel(%arg0: i32, %arg1: memref<16x3xi32, #tpu.memory_space<vmem>>, %arg2: memref<128x128xf32, #tpu.memory_space<vmem>>, %arg3: memref<1x128xf32, #tpu.memory_space<vmem>>, %arg4: memref<16x128xf32, #tpu.memory_space<vmem>>) attributes {dimension_semantics = [#tpu.dimension_semantics<parallel>], iteration_bounds = array<i64: 1>, scalar_prefetch = 0 : i64, scratch_operands = 0 : i64, tpu.core_type = #tpu.core_type<tc>, window_params = [{transform_indices = @transform_0, window_bounds = array<i64: 16, 3>}, {pipeline_mode = #tpu.pipeline_mode<synchronous>, transform_indices = @transform_1, window_bounds = array<i64: 128, 128>}, {pipeline_mode = #tpu.pipeline_mode<synchronous>, transform_indices = @transform_2, window_bounds = array<i64: 1, 128>}, {transform_indices = @transform_3, window_bounds = array<i64: 16, 128>}]} {
    %c0 = arith.constant 0 : index
    %c0_0 = arith.constant 0 : index
    %0 = vector.load %arg1[%c0, %c0_0] : memref<16x3xi32, #tpu.memory_space<vmem>>, vector<16x3xi32>
    %1 = tpu.iota {dimensions = array<i32: 1>} : vector<16x128xi32>
    %cst = arith.constant 0.000000e+00 : f32
    %2 = vector.broadcast %cst : f32 to vector<16x128xf32>
    %3 = vector.extract_strided_slice %0 {offsets = [0, 0], sizes = [16, 1], strides = [1, 1]} : vector<16x3xi32> to vector<16x1xi32>
    %c0_i32 = arith.constant 0 : i32
    %4 = vector.broadcast %c0_i32 : i32 to vector<16x1xi32>
    %5 = arith.addi %3, %4 : vector<16x1xi32>
    %6 = vector.broadcast %5 : vector<16x1xi32> to vector<16x128xi32>
    %7 = arith.cmpi eq, %1, %6 : vector<16x128xi32>
    %8 = arith.extui %7 : vector<16x128xi1> to vector<16x128xi32>
    %9 = arith.sitofp %8 : vector<16x128xi32> to vector<16x128xf32>
    %10 = arith.addf %2, %9 : vector<16x128xf32>
    %11 = vector.extract_strided_slice %0 {offsets = [0, 1], sizes = [16, 1], strides = [1, 1]} : vector<16x3xi32> to vector<16x1xi32>
    %c27_i32 = arith.constant 27 : i32
    %12 = vector.broadcast %c27_i32 : i32 to vector<16x1xi32>
    %13 = arith.addi %11, %12 : vector<16x1xi32>
    %14 = vector.broadcast %13 : vector<16x1xi32> to vector<16x128xi32>
    %15 = arith.cmpi eq, %1, %14 : vector<16x128xi32>
    %16 = arith.extui %15 : vector<16x128xi1> to vector<16x128xi32>
    %17 = arith.sitofp %16 : vector<16x128xi32> to vector<16x128xf32>
    %18 = arith.addf %10, %17 : vector<16x128xf32>
    %19 = vector.extract_strided_slice %0 {offsets = [0, 2], sizes = [16, 1], strides = [1, 1]} : vector<16x3xi32> to vector<16x1xi32>
    %c54_i32 = arith.constant 54 : i32
    %20 = vector.broadcast %c54_i32 : i32 to vector<16x1xi32>
    %21 = arith.addi %19, %20 : vector<16x1xi32>
    %22 = vector.broadcast %21 : vector<16x1xi32> to vector<16x128xi32>
    %23 = arith.cmpi eq, %1, %22 : vector<16x128xi32>
    %24 = arith.extui %23 : vector<16x128xi1> to vector<16x128xi32>
    %25 = arith.sitofp %24 : vector<16x128xi32> to vector<16x128xf32>
    %26 = arith.addf %18, %25 : vector<16x128xf32>
    %c0_1 = arith.constant 0 : index
    %c0_2 = arith.constant 0 : index
    %27 = vector.load %arg2[%c0_1, %c0_2] : memref<128x128xf32, #tpu.memory_space<vmem>>, vector<128x128xf32>
    %cst_3 = arith.constant dense<0.000000e+00> : vector<16x128xf32>
    %28 = tpu.matmul %26, %27, %cst_3 {dimension_numbers = #tpu.dot_dimension_numbers<[1], [0], [0], [1], [0, 0, 1, 1], [], []>, precision = #tpu.contract_precision<fp32>} : vector<16x128xf32>, vector<128x128xf32>, vector<16x128xf32> -> vector<16x128xf32>
    %c0_4 = arith.constant 0 : index
    %c0_5 = arith.constant 0 : index
    %29 = vector.load %arg3[%c0_4, %c0_5] : memref<1x128xf32, #tpu.memory_space<vmem>>, vector<1x128xf32>
    %30 = vector.broadcast %29 : vector<1x128xf32> to vector<16x128xf32>
    %31 = arith.addf %28, %30 : vector<16x128xf32>
    %c0_6 = arith.constant 0 : index
    %c0_7 = arith.constant 0 : index
    %32 = vector.load %arg4[%c0_6, %c0_7] : memref<16x128xf32, #tpu.memory_space<vmem>>, vector<16x128xf32>
    tpu.vector_store %arg4[%c0_6, %c0_7], %31 {strides = array<i32>} : memref<16x128xf32, #tpu.memory_space<vmem>>, vector<16x128xf32>,
    return
  }
  func.func @transform_0(%arg0: i32) -> (i32, i32) {
    %c0_i32 = arith.constant 0 : i32
    %c0_i32_0 = arith.constant 0 : i32
    return %arg0, %c0_i32 : i32, i32
  }
  func.func @transform_1(%arg0: i32) -> (i32, i32) {
    %c0_i32 = arith.constant 0 : i32
    %c0_i32_0 = arith.constant 0 : i32
    %c0_i32_1 = arith.constant 0 : i32
    return %c0_i32, %c0_i32_0 : i32, i32
  }
  func.func @transform_2(%arg0: i32) -> (i32, i32) {
    %c0_i32 = arith.constant 0 : i32
    %c0_i32_0 = arith.constant 0 : i32
    %c0_i32_1 = arith.constant 0 : i32
    return %c0_i32, %c0_i32_0 : i32, i32
  }
  func.func @transform_3(%arg0: i32) -> (i32, i32) {
    %c0_i32 = arith.constant 0 : i32
    %c0_i32_0 = arith.constant 0 : i32
    return %arg0, %c0_i32 : i32, i32
  }
}

</mosaic_0001>

<bundles_post_ra>
// kernel: tpu_custom_call.1
= control target key start
LH: loop header
LB: loop body
LE: loop exit
PB: predicated region body
PF: predicated region fallthrough
CT: control target
= control target key end

     0   :  { %8 = vsyncpa [#allocation3], 0  ;;  %s839_s0 = inlined_call_operand.vmem [shape: s32[16,3], index: 0, kind: input, shape index: {}]   ;;  %s840_s1 = inlined_call_operand.hbm [shape: f32[128,128], index: 1, kind: input, shape index: {}]   ;;  %s841_s2 = inlined_call_operand.vmem [shape: f32[1,128], index: 2, kind: input, shape index: {}]   ;;  %s842_s3 = inlined_call_operand.hbm [shape: f32[16,128], index: 3, kind: output, shape index: {}]  }
   0x1   :  { %9 = vsyncpa [#allocation4], 0  ;;  %s16_s14 = sshll.u32 %s840_s1, 4  ;;  %s600_s15 = smov [#allocation2]   ;;  %s17_s14 = int_to_ptr.hbm [resolvable:$true] %s16_s14 }
   0x2   :  { %s18_s16 = sshll.u32 %s600_s15, 4  ;;  %s601_s17 = smov 128   ;;  %s19_s16 = int_to_ptr.vmem [resolvable:$true] %s18_s16 }
   0x3   :  { %s602_s18 = smov 8  }
   0x4   :  { %24 = dma.hbm_to_vmem [thread:$0]  %s17_s14, 2048, %s19_s16, [#allocation3], %s601_s17, %s601_s17, %s602_s18  }
   0x5   :  { %596 = dma.done.wait [#allocation3], 2048  }
   0x6   :  { %597 = vsyncadd [#allocation3], 4294965248  ;;  %v603_v0 = vmov 0   ;;  %v604_v1 = vmov 2   ;;  %v605_v2 = vmov 1   ;;  %v31_v3 = vld [vmem:[%s839_s0] sm:$0xff] }
   0x7   :  { %540 = vset.pattern.permute.xlu0 %v603_v0  ;;  %542 = vset.pattern.permute.xlu1 %v604_v1  ;;  %v32_v4 = vld [vmem:[%s839_s0 + $0x8] sm:$0xff]  ;;  %v96_v5 = vld [vmem:[#allocation2 + $0x78] sm:$0xff]  ;;  %v65_v6 = vadd.s32 54, %v31_v3  ;;  %v95_v8 = vld [vmem:[#allocation2 + $0x70] sm:$0xff]  ;;  %v49_v25 = vadd.s32 27, %v31_v3  ;;  %s607_s23 = smov [#allocation5]  }
   0x8   :  { %544 = vset.pattern.permute.xlu2 %v605_v2  ;;  %36 = vperm.xlu0 %540, %v31_v3   ;;  %v50_v7 = vadd.s32 27, %v32_v4  ;;  %v94_v9 = vld [vmem:[#allocation2 + $0x68] sm:$0xff]  ;;  %v641_v10 = vand.u32 4294901760, %v96_v5  ;;  %v643_v11 = vand.u32 4294901760, %v95_v8  ;;  %v93_v13 = vld [vmem:[#allocation2 + $0x60] sm:$0xff]  ;;  %v92_v14 = vld [vmem:[#allocation2 + $0x58] sm:$0xff] }
   0x9   :  { %v645_v12 = vand.u32 4294901760, %v94_v9  ;;  %v91_v15 = vld [vmem:[#allocation2 + $0x50] sm:$0xff]  ;;  %68 = vperm.xlu1 %542, %v65_v6   ;;  %v647_v16 = vand.u32 4294901760, %v93_v13  ;;  %v649_v17 = vand.u32 4294901760, %v92_v14  ;;  %v90_v19 = vld [vmem:[#allocation2 + $0x48] sm:$0xff]  ;;  %v89_v24 = vld [vmem:[#allocation2 + $0x40] sm:$0xff] }
   0xa   :  { %55 = vperm.xlu2 %544, %v50_v7   ;;  %v651_v18 = vand.u32 4294901760, %v91_v15  ;;  %v151_v20 = vsub.f32 %v96_v5, %v641_v10  ;;  %v157_v21 = vsub.f32 %v95_v8, %v643_v11  ;;  %315 = vmatpush.msra.mxu3 %v641_v10  ;;  %v658_v23 = vand.u32 4294901760, %v90_v19  ;;  %v88_v40 = vld [vmem:[#allocation2 + $0x38] sm:$0xff]  ;;  %v87_v41 = vld [vmem:[#allocation2 + $0x30] sm:$0xff]  ;;  %v86_v44 = vld [vmem:[#allocation2 + $0x28] sm:$0xff]  ;;  %s481_s26 = sshll.u32 %s842_s3, 4  ;;  %s482_s26 = int_to_ptr.hbm [resolvable:$true] %s481_s26 }
   0xb   :  { %v163_v22 = vsub.f32 %v94_v9, %v645_v12  ;;  %102 = vmatpush.msra.mxu0 %v641_v10  ;;  %v169_v26 = vsub.f32 %v93_v13, %v647_v16  ;;  %v175_v27 = vsub.f32 %v92_v14, %v649_v17  ;;  %v673_v33 = vand.u32 4294901760, %v89_v24  ;;  %v85_v51 = vld [vmem:[#allocation2 + $0x20] sm:$0xff]  ;;  %v84_v57 = vld [vmem:[#allocation2 + $0x18] sm:$0xff]  ;;  %v83_v63 = vld [vmem:[#allocation2 + $0x10] sm:$0xff] }
   0xc   :  { %v662_v28 = vand.u32 4294901760, %v151_v20  ;;  %v664_v29 = vand.u32 4294901760, %v157_v21  ;;  %257 = vmatpush.msra.mxu2 %v151_v20  ;;  %317 = vmatpush.msra.mxu3 %v643_v11  ;;  %v181_v31 = vsub.f32 %v91_v15, %v651_v18  ;;  %v66_v34 = vadd.s32 54, %v32_v4  ;;  %v82_v6 = vld [vmem:[#allocation2 + $0x8] sm:$0xff] }
   0xd   :  { %v666_v30 = vand.u32 4294901760, %v163_v22  ;;  %v670_v32 = vand.u32 4294901760, %v169_v26  ;;  %104 = vmatpush.msra.mxu0 %v643_v11  ;;  %v187_v37 = vsub.f32 %v90_v19, %v658_v23  ;;  %v680_v39 = vand.u32 4294901760, %v175_v27 }
   0xe   :  { %v153_v35 = vsub.f32 %v151_v20, %v662_v28  ;;  %v159_v36 = vsub.f32 %v157_v21, %v664_v29  ;;  %260 = vmatpush.msra.mxu2 %v157_v21  ;;  %319 = vmatpush.msra.mxu3 %v645_v12  ;;  %v683_v43 = vand.u32 4294901760, %v181_v31  ;;  %v193_v47 = vsub.f32 %v89_v24, %v673_v33 }
   0xf   :  { %v165_v38 = vsub.f32 %v163_v22, %v666_v30  ;;  %106 = vmatpush.msra.mxu0 %v645_v12  ;;  %v171_v46 = vsub.f32 %v169_v26, %v670_v32  ;;  %v688_v48 = vand.u32 4294901760, %v187_v37  ;;  %v690_v49 = vand.u32 4294901760, %v88_v40 }
  0x10   :  { %541 = vset.pattern.permute.xlu0 %v605_v2  ;;  %v154_v42 = vand.u32 4294901760, %v153_v35  ;;  %263 = vmatpush.msra.mxu2 %v163_v22  ;;  %v160_v45 = vand.u32 4294901760, %v159_v36  ;;  %v692_v50 = vand.u32 4294901760, %v87_v41  ;;  %v177_v53 = vsub.f32 %v175_v27, %v680_v39 }
  0x11   :  { %52 = vperm.xlu0 %541, %v49_v25   ;;  %543 = vset.pattern.permute.xlu1 %v603_v0  ;;  %v166_v52 = vand.u32 4294901760, %v165_v38  ;;  %v695_v54 = vand.u32 4294901760, %v86_v44  ;;  %v183_v55 = vsub.f32 %v181_v31, %v683_v43  ;;  %v199_v56 = vsub.f32 %v88_v40, %v690_v49 }
  0x12   :  { %545 = vset.pattern.permute.xlu2 %v604_v1  ;;  %39 = vperm.xlu1 %543, %v32_v4   ;;  %v172_v58 = vand.u32 4294901760, %v171_v46  ;;  %v701_v59 = vand.u32 4294901760, %v193_v47  ;;  %v205_v60 = vsub.f32 %v87_v41, %v692_v50  ;;  %v704_v61 = vand.u32 4294901760, %v85_v51 }
  0x13   :  { %71 = vperm.xlu2 %545, %v66_v34   ;;  %155 = vmatpush.msra.mxu1 %v154_v42  ;;  %v189_v62 = vsub.f32 %v187_v37, %v688_v48  ;;  %v178_v0 = vand.u32 4294901760, %v177_v53  ;;  %v709_v2 = vand.u32 4294901760, %v199_v56  ;;  %v211_v3 = vsub.f32 %v86_v44, %v695_v54  ;;  %v81_v53 = vld [vmem:[#allocation2] sm:$0xff] }
  0x14   :  { %266 = vmatpush.msra.mxu2 %v169_v26  ;;  %321 = vmatpush.msra.mxu3 %v647_v16  ;;  %v712_v4 = vand.u32 4294901760, %v84_v57  ;;  %v184_v5 = vand.u32 4294901760, %v183_v55  ;;  %v195_v7 = vsub.f32 %v193_v47, %v701_v59  ;;  %v717_v8 = vand.u32 4294901760, %v205_v60 }
  0x15   :  { %108 = vmatpush.msra.mxu0 %v647_v16  ;;  %161 = vmatpush.msra.mxu1 %v160_v45  ;;  %v217_v9 = vsub.f32 %v85_v51, %v704_v61  ;;  %v720_v13 = vand.u32 4294901760, %v83_v63  ;;  %v190_v14 = vand.u32 4294901760, %v189_v62  ;;  %v201_v15 = vsub.f32 %v199_v56, %v709_v2 }
  0x16   :  { %269 = vmatpush.msra.mxu2 %v175_v27  ;;  %323 = vmatpush.msra.mxu3 %v649_v17  ;;  %v725_v19 = vand.u32 4294901760, %v211_v3  ;;  %v223_v20 = vsub.f32 %v84_v57, %v712_v4  ;;  %v728_v21 = vand.u32 4294901760, %v82_v6  ;;  %v196_v22 = vand.u32 4294901760, %v195_v7 }
  0x17   :  { %110 = vmatpush.msra.mxu0 %v649_v17  ;;  %167 = vmatpush.msra.mxu1 %v166_v52  ;;  %v207_v24 = vsub.f32 %v205_v60, %v717_v8  ;;  %v733_v25 = vand.u32 4294901760, %v217_v9  ;;  %v229_v26 = vsub.f32 %v83_v63, %v720_v13  ;;  %v202_v27 = vand.u32 4294901760, %v201_v15 }
  0x18   :  { %272 = vmatpush.msra.mxu2 %v181_v31  ;;  %325 = vmatpush.msra.mxu3 %v651_v18  ;;  %v213_v31 = vsub.f32 %v211_v3, %v725_v19  ;;  %v739_v34 = vand.u32 4294901760, %v223_v20  ;;  %v235_v35 = vsub.f32 %v82_v6, %v728_v21  ;;  %v763_v55 = vand.u32 4294901760, %v81_v53 }
  0x19   :  { %112 = vmatpush.msra.mxu0 %v651_v18  ;;  %173 = vmatpush.msra.mxu1 %v172_v58  ;;  %v208_v36 = vand.u32 4294901760, %v207_v24  ;;  %v745_v38 = vand.u32 4294901760, %v229_v26 }
  0x1a   :  { %275 = vmatpush.msra.mxu2 %v187_v37  ;;  %327 = vmatpush.msra.mxu3 %v658_v23  ;;  %v219_v37 = vsub.f32 %v217_v9, %v733_v25  ;;  %v214_v40 = vand.u32 4294901760, %v213_v31  ;;  %v225_v41 = vsub.f32 %v223_v20, %v739_v34  ;;  %v750_v42 = vand.u32 4294901760, %v235_v35 }
  0x1b   :  { %114 = vmatpush.msra.mxu0 %v658_v23  ;;  %179 = vmatpush.msra.mxu1 %v178_v0  ;;  %v231_v45 = vsub.f32 %v229_v26, %v745_v38 }
  0x1c   :  { %278 = vmatpush.msra.mxu2 %v193_v47  ;;  %329 = vmatpush.msra.mxu3 %v673_v33  ;;  %v220_v44 = vand.u32 4294901760, %v219_v37  ;;  %v226_v46 = vand.u32 4294901760, %v225_v41  ;;  %v237_v47 = vsub.f32 %v235_v35, %v750_v42 }
  0x1d   :  { %116 = vmatpush.msra.mxu0 %v673_v33  ;;  %185 = vmatpush.msra.mxu1 %v184_v5  ;;  %v232_v51 = vand.u32 4294901760, %v231_v45 }
  0x1e   :  { %281 = vmatpush.msra.mxu2 %v199_v56  ;;  %331 = vmatpush.msra.mxu3 %v690_v49  ;;  %v238_v52 = vand.u32 4294901760, %v237_v47  ;;  %v241_v56 = vsub.f32 %v81_v53, %v763_v55 }
  0x1f   :  { %118 = vmatpush.msra.mxu0 %v690_v49  ;;  %191 = vmatpush.msra.mxu1 %v190_v14 }
  0x20   :  { %284 = vmatpush.msra.mxu2 %v205_v60  ;;  %333 = vmatpush.msra.mxu3 %v692_v50  ;;  %v242_v57 = vand.u32 4294901760, %v241_v56 }
  0x21   :  { %120 = vmatpush.msra.mxu0 %v692_v50  ;;  %197 = vmatpush.msra.mxu1 %v196_v22 }
  0x22   :  { %287 = vmatpush.msra.mxu2 %v211_v3  ;;  %335 = vmatpush.msra.mxu3 %v695_v54 }
  0x23   :  { %122 = vmatpush.msra.mxu0 %v695_v54  ;;  %203 = vmatpush.msra.mxu1 %v202_v27 }
  0x24   :  { %290 = vmatpush.msra.mxu2 %v217_v9  ;;  %337 = vmatpush.msra.mxu3 %v704_v61 }
  0x25   :  { %124 = vmatpush.msra.mxu0 %v704_v61  ;;  %209 = vmatpush.msra.mxu1 %v208_v36 }
  0x26   :  { %293 = vmatpush.msra.mxu2 %v223_v20  ;;  %339 = vmatpush.msra.mxu3 %v712_v4 }
  0x27   :  { %126 = vmatpush.msra.mxu0 %v712_v4  ;;  %215 = vmatpush.msra.mxu1 %v214_v40 }
  0x28   :  { %296 = vmatpush.msra.mxu2 %v229_v26  ;;  %341 = vmatpush.msra.mxu3 %v720_v13 }
  0x29   :  { %128 = vmatpush.msra.mxu0 %v720_v13  ;;  %221 = vmatpush.msra.mxu1 %v220_v44 }
  0x2a   :  { %299 = vmatpush.msra.mxu2 %v235_v35  ;;  %343 = vmatpush.msra.mxu3 %v728_v21 }
  0x2b   :  { %130 = vmatpush.msra.mxu0 %v728_v21  ;;  %227 = vmatpush.msra.mxu1 %v226_v46 }
  0x2c   :  { %546 = vset.pattern.permute.xlu0 %v604_v1  ;;  %345 = vmatpush.msra.mxu3 %v763_v55  ;;  %v243_v1 = vsub.f32 %v241_v56, %v242_v57 }
  0x2d   :  { %233 = vmatpush.msra.mxu1 %v232_v51  ;;  %132 = vmatpush.msra.mxu0 %v763_v55 }
  0x2e   :  { %516 = vmatpush.msrb.mxu3 %v641_v10  ;;  %302 = vmatpush.msra.mxu2 %v241_v56  ;;  %v244_v58 = vand.u32 4294901760, %v243_v1 }
  0x2f   :  { %239 = vmatpush.msra.mxu1 %v238_v52  ;;  %362 = vmatpush.msrb.mxu0 %v662_v28 }
  0x30   :  { %500 = vmatpush.msrb.mxu2 %v662_v28  ;;  %517 = vmatpush.msrb.mxu3 %v643_v11  ;;  %v606_v28 = vmov 0.0  }
  0x31   :  { %366 = vmatpush.msrb.mxu0 %v664_v29  ;;  %245 = vmatpush.msra.mxu1 %v244_v58 }
  0x32   :  { %501 = vmatpush.msrb.mxu2 %v664_v29  ;;  %518 = vmatpush.msrb.mxu3 %v645_v12 }
  0x33   :  { %370 = vmatpush.msrb.mxu0 %v666_v30  ;;  %433 = vmatpush.msrb.mxu1 %v641_v10 }
  0x34   :  { %502 = vmatpush.msrb.mxu2 %v666_v30  ;;  %519 = vmatpush.msrb.mxu3 %v647_v16 }
  0x35   :  { %374 = vmatpush.msrb.mxu0 %v670_v32  ;;  %435 = vmatpush.msrb.mxu1 %v643_v11  ;;  %v33_v11 = vlaneseq }
  0x36   :  { %503 = vmatpush.msrb.mxu2 %v670_v32  ;;  %520 = vmatpush.msrb.mxu3 %v649_v17 }
  0x37   :  { %378 = vmatpush.msrb.mxu0 %v680_v39  ;;  %437 = vmatpush.msrb.mxu1 %v645_v12 }
  0x38   :  { %504 = vmatpush.msrb.mxu2 %v680_v39  ;;  %521 = vmatpush.msrb.mxu3 %v651_v18 }
  0x39   :  { %382 = vmatpush.msrb.mxu0 %v683_v43  ;;  %439 = vmatpush.msrb.mxu1 %v647_v16 }
  0x3a   :  { %505 = vmatpush.msrb.mxu2 %v683_v43  ;;  %522 = vmatpush.msrb.mxu3 %v658_v23 }
  0x3b   :  { %386 = vmatpush.msrb.mxu0 %v688_v48  ;;  %441 = vmatpush.msrb.mxu1 %v649_v17  ;;  %v34_v17 = vand.u32 127, %v33_v11 }
  0x3c   :  { %506 = vmatpush.msrb.mxu2 %v688_v48  ;;  %523 = vmatpush.msrb.mxu3 %v673_v33 }
  0x3d   :  { %390 = vmatpush.msrb.mxu0 %v701_v59  ;;  %443 = vmatpush.msrb.mxu1 %v651_v18 }
  0x3e   :  { %507 = vmatpush.msrb.mxu2 %v701_v59  ;;  %524 = vmatpush.msrb.mxu3 %v690_v49 }
  0x3f   :  { %394 = vmatpush.msrb.mxu0 %v709_v2  ;;  %445 = vmatpush.msrb.mxu1 %v658_v23 }
  0x40   :  { %508 = vmatpush.msrb.mxu2 %v709_v2  ;;  %525 = vmatpush.msrb.mxu3 %v692_v50 }
  0x41   :  { %398 = vmatpush.msrb.mxu0 %v717_v8  ;;  %447 = vmatpush.msrb.mxu1 %v673_v33 }
  0x42   :  { %509 = vmatpush.msrb.mxu2 %v717_v8  ;;  %526 = vmatpush.msrb.mxu3 %v695_v54  ;;  %v547_v8 = vld [vmem:[%s841_s2] ss:$0 sm:$0xff]  ;;  %s479_s2 = sshll.u32 %s607_s23, 4  ;;  %s480_s2 = int_to_ptr.vmem [resolvable:$true] %s479_s2 }
  0x43   :  { %402 = vmatpush.msrb.mxu0 %v725_v19  ;;  %449 = vmatpush.msrb.mxu1 %v690_v49 }
  0x44   :  { %510 = vmatpush.msrb.mxu2 %v725_v19  ;;  %527 = vmatpush.msrb.mxu3 %v704_v61 }
  0x45   :  { %406 = vmatpush.msrb.mxu0 %v733_v25  ;;  %451 = vmatpush.msrb.mxu1 %v692_v50 }
  0x46   :  { %511 = vmatpush.msrb.mxu2 %v733_v25  ;;  %528 = vmatpush.msrb.mxu3 %v712_v4 }
  0x47   :  { %410 = vmatpush.msrb.mxu0 %v739_v34  ;;  %453 = vmatpush.msrb.mxu1 %v695_v54 }
  0x48   :  { %512 = vmatpush.msrb.mxu2 %v739_v34  ;;  %529 = vmatpush.msrb.mxu3 %v720_v13 }
  0x49   :  { %414 = vmatpush.msrb.mxu0 %v745_v38  ;;  %455 = vmatpush.msrb.mxu1 %v704_v61 }
  0x4a   :  { %513 = vmatpush.msrb.mxu2 %v745_v38  ;;  %530 = vmatpush.msrb.mxu3 %v728_v21 }
  0x4b   :  { %418 = vmatpush.msrb.mxu0 %v750_v42  ;;  %457 = vmatpush.msrb.mxu1 %v712_v4 }
  0x4c   :  { %514 = vmatpush.msrb.mxu2 %v750_v42  ;;  %531 = vmatpush.msrb.mxu3 %v763_v55 }
  0x4d   :  { %422 = vmatpush.msrb.mxu0 %v242_v57  ;;  %459 = vmatpush.msrb.mxu1 %v720_v13 }
  0x4e   :  { %515 = vmatpush.msrb.mxu2 %v242_v57 }
  0x4f   :  { %461 = vmatpush.msrb.mxu1 %v728_v21 }
  0x51   :  { %463 = vmatpush.msrb.mxu1 %v763_v55 }
  0x64   :  { %v56_v10 = vpop.permute.xlu2 %55 }
  0x65   :  { %vm58_vm1 = vcmp.eq.s32.totalorder %v34_v17, %v56_v10 }
  0x66   :  { %v497_v30 = vsel %vm58_vm1, 1.0, %v606_v28 }
  0x6d   :  { %v72_v18 = vpop.permute.xlu2 %71 }
  0x6e   :  { %vm74_vm4 = vcmp.eq.s32.totalorder %v34_v17, %v72_v18 }
  0x6f   :  { %v499_v49 = vsel %vm74_vm4, 1.0, %v606_v28 }
  0x7a   :  { %v37_v12 = vpop.permute.xlu0 %36 }
  0x7b   :  { %v69_v16 = vpop.permute.xlu1 %68  ;;  %vm41_vm0 = vcmp.eq.s32.totalorder %v34_v17, %v37_v12 }
  0x7c   :  { %vm73_vm2 = vcmp.eq.s32.totalorder %v34_v17, %v69_v16  ;;  %v494_v29 = vsel %vm41_vm0, 1.0, %v606_v28 }
  0x7d   :  { %v498_v43 = vsel %vm73_vm2, 1.0, %v606_v28 }
  0x83   :  { %v53_v23 = vpop.permute.xlu0 %52 }
  0x84   :  { %vm57_vm3 = vcmp.eq.s32.totalorder %v34_v17, %v53_v23  ;;  %v40_v33 = vpop.permute.xlu1 %39 }
  0x85   :  { %v496_v32 = vsel %vm57_vm3, 1.0, %v606_v28  ;;  %vm42_vm5 = vcmp.eq.s32.totalorder %v34_v17, %v40_v33 }
  0x86   :  { %v63_v39 = vadd.f32 %v496_v32, %v494_v29  ;;  %v495_v48 = vsel %vm42_vm5, 1.0, %v606_v28 }
  0x87   :  { %v64_v54 = vadd.f32 %v497_v30, %v495_v48 }
  0x88   :  { %v79_v50 = vadd.f32 %v498_v43, %v63_v39 }
  0x89   :  { %v80_v60 = vadd.f32 %v499_v49, %v64_v54 }
  0x8a   :  { %v133_v59 = vand.u32 4294901760, %v79_v50 }
  0x8b   :  { %v141_v61 = vand.u32 4294901760, %v80_v60 }
  0x8c   :  { %247 = vmatmul.f32.vlgmr.msra.gmra.mxu1 %v133_v59  ;;  %v134_v62 = vsub.f32 %v79_v50, %v133_v59 }
  0x8d   :  { %v142_v0 = vsub.f32 %v80_v60, %v141_v61 }
  0x8e   :  { %305 = vmatmul.f32.vlgmr.msra.gmra.mxu2 %v134_v62  ;;  %v135_v63 = vand.u32 4294901760, %v134_v62 }
  0x8f   :  { %v143_v4 = vand.u32 4294901760, %v142_v0 }
  0x90   :  { %349 = vmatmul.f32.vlgmr.msra.gmra.mxu3 %v135_v63  ;;  %v136_v2 = vsub.f32 %v134_v62, %v135_v63 }
  0x91   :  { %v144_v5 = vsub.f32 %v142_v0, %v143_v4 }
  0x92   :  { %v137_v3 = vand.u32 4294901760, %v136_v2 }
  0x93   :  { %v145_v6 = vand.u32 4294901760, %v144_v5 }
  0x94   :  { %138 = vmatmul.f32.vlgmr.msra.gmra.mxu0 %v137_v3  ;;  %251 = vmatmul.f32.gmra.mxu1 %v141_v61 }
  0x96   :  { %310 = vmatmul.f32.gmra.mxu2 %v142_v0 }
  0x98   :  { %355 = vmatmul.f32.gmra.mxu3 %v143_v4 }
  0x9c   :  { %146 = vmatmul.f32.gmra.mxu0 %v145_v6  ;;  %465 = vmatmul.f32.vlgmr.msrb.gmra.mxu1 %v133_v59 }
  0x9e   :  { %428 = vmatmul.f32.vlgmr.msrb.gmra.mxu2 %v141_v61 }
  0xa0   :  { %469 = vmatmul.f32.vlgmr.msrb.gmra.mxu3 %v141_v61 }
  0xa4   :  { %424 = vmatmul.f32.vlgmr.msrb.gmra.mxu0 %v133_v59 }
 0x109   :  { %v248_v7 = vpop.f32.mrf.mxu1 }
 0x111   :  { %v139_v9 = vpop.f32.mrf.mxu0  ;;  %v306_v13 = vpop.f32.mrf.mxu2 }
 0x112   :  { %v140_v15 = vadd.f32 %v547_v8, %v139_v9  ;;  %v252_v20 = vpop.f32.mrf.mxu1 }
 0x113   :  { %v350_v14 = vpop.f32.mrf.mxu3 }
 0x114   :  { %v249_v19 = vadd.f32 %v248_v7, %v140_v15 }
 0x116   :  { %v307_v26 = vadd.f32 %v306_v13, %v249_v19 }
 0x118   :  { %v351_v34 = vadd.f32 %v350_v14, %v307_v26 }
 0x119   :  { %v147_v21 = vpop.f32.mrf.mxu0  ;;  %v311_v24 = vpop.f32.mrf.mxu2 }
 0x11a   :  { %v148_v22 = vadd.f32 %v547_v8, %v147_v21  ;;  %v466_v40 = vpop.f32.mrf.mxu1 }
 0x11b   :  { %v356_v25 = vpop.f32.mrf.mxu3 }
 0x11c   :  { %v253_v27 = vadd.f32 %v252_v20, %v148_v22 }
 0x11e   :  { %v312_v31 = vadd.f32 %v311_v24, %v253_v27 }
 0x120   :  { %v357_v35 = vadd.f32 %v356_v25, %v312_v31 }
 0x121   :  { %v425_v36 = vpop.f32.mrf.mxu0  ;;  %v429_v38 = vpop.f32.mrf.mxu2 }
 0x122   :  { %v426_v37 = vadd.f32 %v425_v36, %v351_v34  ;;  %v430_v41 = vadd.f32 %v429_v38, %v357_v35 }
 0x123   :  { %v470_v42 = vpop.f32.mrf.mxu3 }
 0x124   :  { %v467_v44 = vadd.f32 %v466_v40, %v426_v37  ;;  %v471_v45 = vadd.f32 %v470_v42, %v430_v41 }
 0x126   :  { %473 = vst [vmem:[#allocation5] sm:$0xff] %v467_v44 }
 0x127   :  { %474 = vst [vmem:[#allocation5 + $0x8] sm:$0xff] %v471_v45 }
 0x128   :  { %487 = dma.vmem_to_hbm [thread:$0]  %s480_s2, 256, %s482_s26, [#allocation4], %s601_s17, %s601_s17, %s602_s18  }
 0x129   :  { %598 = dma.done.wait [#allocation4], 256  }
 0x12a   :  { %599 = vsyncadd [#allocation4], 4294967040 }
 0x12b   :  { %492 = vsyncpa [#allocation3], 1 }
 0x12c   :  { %493 = vsyncpa [#allocation4], 1 }

</bundles_post_ra>
